<compile_context>
chip_gen: v5e
topology: v5e:2x2
jax: 0.10.0
libtpu: 0.0.40
codegen_flags: <defaults>
</compile_context>

<pallas_src>
import functools

import jax
import jax.numpy as jnp
from jax.experimental import pallas as pl
from jax.experimental.pallas import tpu as pltpu

LANE = 128  # lane width; hidden feature dims are padded to this


def _round_up(x, m):
    return (x + m - 1) // m * m


def _mlp_kernel(x_ref, w1_ref, wmid_ref, b_ref, o_ref, *, out_dim, precision):
    dot = functools.partial(jnp.dot, preferred_element_type=jnp.float32,
                            precision=precision)
    b = b_ref[...]                                  # (8, 128); rows 0..4 are real biases

    # Layer 1: un-padded K=35 contraction (Mosaic masks the padding lanes).
    h = jnp.maximum(dot(x_ref[...], w1_ref[...]) + b[0:1, :], 0.0)

    n_mid = wmid_ref.shape[0]                       # 4 stacked (128,128) weights (static)
    for i in range(n_mid - 1):                      # layers 2..4 with ReLU
        h = jnp.maximum(dot(h, wmid_ref[i]) + b[i + 1:i + 2, :], 0.0)

    m = dot(h, wmid_ref[n_mid - 1]) + b[n_mid:n_mid + 1, :]   # layer 5
    # Narrow store: only the 2 useful lanes are written back (contiguous in HBM).
    o_ref[...] = jnp.tanh(m)[:, :out_dim]


def seekndestroy_forward(x, params, *, tile_b=4096, precision=None):
    """x: [B, input_dim] float32; params: list of (W [in,out], b [1,out]) per layer."""
    assert tile_b % 8 == 0
    B, in_dim = x.shape
    out_dim = params[-1][0].shape[1]
    n_layers = len(params)
    assert in_dim <= LANE and out_dim <= LANE and n_layers <= 8
    assert params[0][0].shape[1] == LANE

    if x.dtype != jnp.float32:
        x = x.astype(jnp.float32)   # no-op for f32 inputs; never a gratuitous HBM pass

    # Layer-1 weight keeps its true input dim so x can stream un-padded.
    w1 = params[0][0].astype(jnp.float32)                                   # (in_dim, 128)
    # Layers 2..5: zero-pad to (128,128) and stack into one constant operand.
    # Zero rows/cols are exact no-ops through matmul / ReLU / tanh.
    wmid = jnp.stack([
        jnp.pad(w.astype(jnp.float32),
                ((0, LANE - w.shape[0]), (0, LANE - w.shape[1])))
        for w, _ in params[1:]])                                            # (4, 128, 128)
    biases = jnp.stack([
        jnp.pad(b.astype(jnp.float32).reshape(-1), (0, LANE - b.shape[-1]))
        for _, b in params])                                                # (5, 128)
    biases = jnp.pad(biases, ((0, 8 - biases.shape[0]), (0, 0)))            # (8, 128)

    # ---- batch tiling ----
    if B <= tile_b:
        # One tile would cover the whole batch.  For big batches split into two
        # grid steps so v7x's two TensorCores both get work; tiny batches stay
        # single-step (multiple of 8 sublanes either way).
        tb = _round_up(B, 8) if B < 1024 else _round_up((B + 1) // 2, 8)
    else:
        tb = tile_b
    grid = (pl.cdiv(B, tb),)   # ragged last tile: Pallas clamps the edge-block DMAs

    kernel = functools.partial(_mlp_kernel, out_dim=out_dim, precision=precision)

    # Constant index maps -> weights/biases DMA'd once, VMEM-resident across tiles.
    x_spec    = pl.BlockSpec((tb, in_dim), lambda i: (i, 0))
    w1_spec   = pl.BlockSpec(w1.shape,     lambda i: (0, 0))
    wmid_spec = pl.BlockSpec(wmid.shape,   lambda i: (0, 0, 0))
    b_spec    = pl.BlockSpec(biases.shape, lambda i: (0, 0))
    # Narrow lane output: out_dim == full row width -> contiguous per-tile writeback.
    out_spec  = pl.BlockSpec((tb, out_dim), lambda i: (i, 0))

    # Advisory cost hint for the XLA scheduler (true HBM bytes after the shrink).
    flops = 2 * B * (in_dim * LANE + (n_layers - 1) * LANE * LANE)
    bytes_accessed = (B * (in_dim + out_dim) + w1.size + wmid.size + biases.size) * 4
    cost = pl.CostEstimate(flops=flops, transcendentals=B * LANE,
                           bytes_accessed=bytes_accessed)

    return pl.pallas_call(
        kernel,
        out_shape=jax.ShapeDtypeStruct((B, out_dim), jnp.float32),
        grid=grid,
        in_specs=[x_spec, w1_spec, wmid_spec, b_spec],
        out_specs=out_spec,
        compiler_params=pltpu.CompilerParams(
            dimension_semantics=("parallel",),       # shard batch tiles over v7x's 2 TCs
            vmem_limit_bytes=48 * 1024 * 1024),      # covers tb=4096 on v5e's 16 MiB scope
        cost_estimate=cost,
    )(x, w1, wmid, biases)


def init_params(key, input_dim=35, output_dim=2):
    """Deterministic synthetic init (PyTorch-style uniform fan-in scaling)."""
    dims = [input_dim, 128, 64, 32, 16, output_dim]
    params = []
    for i in range(len(dims) - 1):
        fan_in, fan_out = dims[i], dims[i + 1]
        key, kw, kb = jax.random.split(key, 3)
        bound = 1.0 / (fan_in ** 0.5)
        w = jax.random.uniform(kw, (fan_in, fan_out), jnp.float32, -bound, bound)
        b = jax.random.uniform(kb, (1, fan_out), jnp.float32, -bound, bound)
        params.append((w, b))
    return params


def reference_forward(x, params):
    h = x
    for i, (w, b) in enumerate(params):
        h = h @ w + b
        if i < len(params) - 1:
            h = jnp.maximum(h, 0.0)
        else:
            h = jnp.tanh(h)
    return h


if __name__ == "__main__":
    key = jax.random.PRNGKey(0)
    key, kx1, kx2, kx3 = jax.random.split(key, 4)

    INPUT_DIM, OUTPUT_DIM = 35, 2
    params = init_params(key, INPUT_DIM, OUTPUT_DIM)
    fwd = functools.partial(seekndestroy_forward, params=params)

    # (batch, key): aligned single tile, ragged single tile, 2-step grid with
    # a ragged last tile (exercises the megacore split + edge-block clamping).
    for kx, B in ((kx1, 8), (kx2, 37), (kx3, 1237)):
        x = jax.random.normal(kx, (B, INPUT_DIM), jnp.float32)
        out = jax.block_until_ready(fwd(x))
        ref = reference_forward(x, params)
        assert out.shape == (B, OUTPUT_DIM)
        assert out.dtype == jnp.float32
        assert jnp.allclose(out, ref, atol=2e-5, rtol=2e-5), \
            float(jnp.max(jnp.abs(out - ref)))

    print("KERNEL_OK")
</pallas_src>

<mosaic_0001>
module attributes {stable_mosaic.version = 11 : i64} {
  func.func @_mlp_kernel(%arg0: i32, %arg1: memref<8x35xf32, #tpu.memory_space<vmem>>, %arg2: memref<35x128xf32, #tpu.memory_space<vmem>>, %arg3: memref<4x128x128xf32, #tpu.memory_space<vmem>>, %arg4: memref<8x128xf32, #tpu.memory_space<vmem>>, %arg5: memref<8x2xf32, #tpu.memory_space<vmem>>) attributes {dimension_semantics = [#tpu.dimension_semantics<parallel>], iteration_bounds = array<i64: 1>, scalar_prefetch = 0 : i64, scratch_operands = 0 : i64, tpu.core_type = #tpu.core_type<tc>, window_params = [{transform_indices = @transform_0, window_bounds = array<i64: 8, 35>}, {pipeline_mode = #tpu.pipeline_mode<synchronous>, transform_indices = @transform_1, window_bounds = array<i64: 35, 128>}, {pipeline_mode = #tpu.pipeline_mode<synchronous>, transform_indices = @transform_2, window_bounds = array<i64: 4, 128, 128>}, {pipeline_mode = #tpu.pipeline_mode<synchronous>, transform_indices = @transform_3, window_bounds = array<i64: 8, 128>}, {transform_indices = @transform_4, window_bounds = array<i64: 8, 2>}]} {
    %c0 = arith.constant 0 : index
    %c0_0 = arith.constant 0 : index
    %0 = vector.load %arg4[%c0, %c0_0] : memref<8x128xf32, #tpu.memory_space<vmem>>, vector<8x128xf32>
    %c0_1 = arith.constant 0 : index
    %c0_2 = arith.constant 0 : index
    %1 = vector.load %arg1[%c0_1, %c0_2] : memref<8x35xf32, #tpu.memory_space<vmem>>, vector<8x35xf32>
    %c0_3 = arith.constant 0 : index
    %c0_4 = arith.constant 0 : index
    %2 = vector.load %arg2[%c0_3, %c0_4] : memref<35x128xf32, #tpu.memory_space<vmem>>, vector<35x128xf32>
    %cst = arith.constant dense<0.000000e+00> : vector<8x128xf32>
    %3 = tpu.matmul %1, %2, %cst {dimension_numbers = #tpu.dot_dimension_numbers<[1], [0], [0], [1], [0, 0, 1, 1], [], []>} : vector<8x35xf32>, vector<35x128xf32>, vector<8x128xf32> -> vector<8x128xf32>
    %4 = vector.extract_strided_slice %0 {offsets = [0, 0], sizes = [1, 128], strides = [1, 1]} : vector<8x128xf32> to vector<1x128xf32>
    %5 = vector.broadcast %4 : vector<1x128xf32> to vector<8x128xf32>
    %6 = arith.addf %3, %5 : vector<8x128xf32>
    %cst_5 = arith.constant 0.000000e+00 : f32
    %7 = vector.broadcast %cst_5 : f32 to vector<8x128xf32>
    %8 = arith.maximumf %6, %7 : vector<8x128xf32>
    %c0_6 = arith.constant 0 : index
    %c0_7 = arith.constant 0 : index
    %c0_8 = arith.constant 0 : index
    %9 = vector.load %arg3[%c0_6, %c0_7, %c0_8] : memref<4x128x128xf32, #tpu.memory_space<vmem>>, vector<1x128x128xf32>
    %10 = vector.shape_cast %9 : vector<1x128x128xf32> to vector<128x128xf32>
    %cst_9 = arith.constant dense<0.000000e+00> : vector<8x128xf32>
    %11 = tpu.matmul %8, %10, %cst_9 {dimension_numbers = #tpu.dot_dimension_numbers<[1], [0], [0], [1], [0, 0, 1, 1], [], []>} : vector<8x128xf32>, vector<128x128xf32>, vector<8x128xf32> -> vector<8x128xf32>
    %12 = vector.extract_strided_slice %0 {offsets = [1, 0], sizes = [1, 128], strides = [1, 1]} : vector<8x128xf32> to vector<1x128xf32>
    %13 = vector.broadcast %12 : vector<1x128xf32> to vector<8x128xf32>
    %14 = arith.addf %11, %13 : vector<8x128xf32>
    %cst_10 = arith.constant 0.000000e+00 : f32
    %15 = vector.broadcast %cst_10 : f32 to vector<8x128xf32>
    %16 = arith.maximumf %14, %15 : vector<8x128xf32>
    %c1 = arith.constant 1 : index
    %c0_11 = arith.constant 0 : index
    %c0_12 = arith.constant 0 : index
    %17 = vector.load %arg3[%c1, %c0_11, %c0_12] : memref<4x128x128xf32, #tpu.memory_space<vmem>>, vector<1x128x128xf32>
    %18 = vector.shape_cast %17 : vector<1x128x128xf32> to vector<128x128xf32>
    %cst_13 = arith.constant dense<0.000000e+00> : vector<8x128xf32>
    %19 = tpu.matmul %16, %18, %cst_13 {dimension_numbers = #tpu.dot_dimension_numbers<[1], [0], [0], [1], [0, 0, 1, 1], [], []>} : vector<8x128xf32>, vector<128x128xf32>, vector<8x128xf32> -> vector<8x128xf32>
    %20 = vector.extract_strided_slice %0 {offsets = [2, 0], sizes = [1, 128], strides = [1, 1]} : vector<8x128xf32> to vector<1x128xf32>
    %21 = vector.broadcast %20 : vector<1x128xf32> to vector<8x128xf32>
    %22 = arith.addf %19, %21 : vector<8x128xf32>
    %cst_14 = arith.constant 0.000000e+00 : f32
    %23 = vector.broadcast %cst_14 : f32 to vector<8x128xf32>
    %24 = arith.maximumf %22, %23 : vector<8x128xf32>
    %c2 = arith.constant 2 : index
    %c0_15 = arith.constant 0 : index
    %c0_16 = arith.constant 0 : index
    %25 = vector.load %arg3[%c2, %c0_15, %c0_16] : memref<4x128x128xf32, #tpu.memory_space<vmem>>, vector<1x128x128xf32>
    %26 = vector.shape_cast %25 : vector<1x128x128xf32> to vector<128x128xf32>
    %cst_17 = arith.constant dense<0.000000e+00> : vector<8x128xf32>
    %27 = tpu.matmul %24, %26, %cst_17 {dimension_numbers = #tpu.dot_dimension_numbers<[1], [0], [0], [1], [0, 0, 1, 1], [], []>} : vector<8x128xf32>, vector<128x128xf32>, vector<8x128xf32> -> vector<8x128xf32>
    %28 = vector.extract_strided_slice %0 {offsets = [3, 0], sizes = [1, 128], strides = [1, 1]} : vector<8x128xf32> to vector<1x128xf32>
    %29 = vector.broadcast %28 : vector<1x128xf32> to vector<8x128xf32>
    %30 = arith.addf %27, %29 : vector<8x128xf32>
    %cst_18 = arith.constant 0.000000e+00 : f32
    %31 = vector.broadcast %cst_18 : f32 to vector<8x128xf32>
    %32 = arith.maximumf %30, %31 : vector<8x128xf32>
    %c3 = arith.constant 3 : index
    %c0_19 = arith.constant 0 : index
    %c0_20 = arith.constant 0 : index
    %33 = vector.load %arg3[%c3, %c0_19, %c0_20] : memref<4x128x128xf32, #tpu.memory_space<vmem>>, vector<1x128x128xf32>
    %34 = vector.shape_cast %33 : vector<1x128x128xf32> to vector<128x128xf32>
    %cst_21 = arith.constant dense<0.000000e+00> : vector<8x128xf32>
    %35 = tpu.matmul %32, %34, %cst_21 {dimension_numbers = #tpu.dot_dimension_numbers<[1], [0], [0], [1], [0, 0, 1, 1], [], []>} : vector<8x128xf32>, vector<128x128xf32>, vector<8x128xf32> -> vector<8x128xf32>
    %36 = vector.extract_strided_slice %0 {offsets = [4, 0], sizes = [1, 128], strides = [1, 1]} : vector<8x128xf32> to vector<1x128xf32>
    %37 = vector.broadcast %36 : vector<1x128xf32> to vector<8x128xf32>
    %38 = arith.addf %35, %37 : vector<8x128xf32>
    %39 = math.tanh %38 : vector<8x128xf32>
    %40 = vector.extract_strided_slice %39 {offsets = [0, 0], sizes = [8, 2], strides = [1, 1]} : vector<8x128xf32> to vector<8x2xf32>
    %c0_22 = arith.constant 0 : index
    %c0_23 = arith.constant 0 : index
    %41 = vector.load %arg5[%c0_22, %c0_23] : memref<8x2xf32, #tpu.memory_space<vmem>>, vector<8x2xf32>
    tpu.vector_store %arg5[%c0_22, %c0_23], %40 {strides = array<i32>} : memref<8x2xf32, #tpu.memory_space<vmem>>, vector<8x2xf32>,
    return
  }
  func.func @transform_0(%arg0: i32) -> (i32, i32) {
    %c0_i32 = arith.constant 0 : i32
    %c0_i32_0 = arith.constant 0 : i32
    return %arg0, %c0_i32 : i32, i32
  }
  func.func @transform_1(%arg0: i32) -> (i32, i32) {
    %c0_i32 = arith.constant 0 : i32
    %c0_i32_0 = arith.constant 0 : i32
    %c0_i32_1 = arith.constant 0 : i32
    return %c0_i32, %c0_i32_0 : i32, i32
  }
  func.func @transform_2(%arg0: i32) -> (i32, i32, i32) {
    %c0_i32 = arith.constant 0 : i32
    %c0_i32_0 = arith.constant 0 : i32
    %c0_i32_1 = arith.constant 0 : i32
    %c0_i32_2 = arith.constant 0 : i32
    return %c0_i32, %c0_i32_0, %c0_i32_1 : i32, i32, i32
  }
  func.func @transform_3(%arg0: i32) -> (i32, i32) {
    %c0_i32 = arith.constant 0 : i32
    %c0_i32_0 = arith.constant 0 : i32
    %c0_i32_1 = arith.constant 0 : i32
    return %c0_i32, %c0_i32_0 : i32, i32
  }
  func.func @transform_4(%arg0: i32) -> (i32, i32) {
    %c0_i32 = arith.constant 0 : i32
    %c0_i32_0 = arith.constant 0 : i32
    return %arg0, %c0_i32 : i32, i32
  }
}

</mosaic_0001>

<bundles_post_ra>
// kernel: tpu_custom_call.1
= control target key start
LH: loop header
LB: loop body
LE: loop exit
PB: predicated region body
PF: predicated region fallthrough
CT: control target
= control target key end

     0   :  { %9 = vsyncpa [#allocation3], 0  ;;  %s442_s0 = inlined_call_operand.hbm [shape: f32[8,35], index: 0, kind: input, shape index: {}]   ;;  %s443_s1 = inlined_call_operand.hbm [shape: f32[35,128], index: 1, kind: input, shape index: {}]   ;;  %s444_s2 = inlined_call_operand.hbm [shape: f32[4,128,128], index: 2, kind: input, shape index: {}]   ;;  %s445_s3 = inlined_call_operand.hbm [shape: f32[8,128], index: 3, kind: input, shape index: {}]   ;;  %s446_s4 = inlined_call_operand.vmem [shape: f32[8,2], index: 4, kind: output, shape index: {}]  }
   0x1   :  { %10 = vsyncpa [#allocation5], 0  ;;  %s27_s17 = sshll.u32 %s443_s1, 4  ;;  %s28_s17 = int_to_ptr.hbm [resolvable:$true] %s27_s17 }
   0x2   :  { %11 = vsyncpa [#allocation8], 0  ;;  %s389_s18 = smov [#allocation4]   ;;  %s17_s22 = sshll.u32 %s442_s0, 4  ;;  %s18_s22 = int_to_ptr.hbm [resolvable:$true] %s17_s22 }
   0x3   :  { %s29_s19 = sshll.u32 %s389_s18, 4  ;;  %s390_s23 = smov 128   ;;  %s30_s19 = int_to_ptr.vmem [resolvable:$true] %s29_s19 }
   0x4   :  { %s391_s24 = smov 8   ;;  %s392_s25 = smov [#allocation2]  }
   0x5   :  { %35 = dma.hbm_to_vmem [thread:$0]  %s28_s17, 640, %s30_s19, [#allocation5], %s390_s23, %s390_s23, %s391_s24  }
   0x6   :  { %s19_s26 = sshll.u32 %s392_s25, 4  ;;  %s40_s29 = sshll.u32 %s444_s2, 4  ;;  %s20_s26 = int_to_ptr.vmem [resolvable:$true] %s19_s26  ;;  %s41_s29 = int_to_ptr.hbm [resolvable:$true] %s40_s29 }
   0x7   :  { %22 = dma.hbm_to_vmem [thread:$0]  %s18_s22, 128, %s20_s26, [#allocation3]  }
   0x8   :  { %s54_s5 = sshll.u32 %s445_s3, 4  ;;  %s393_s6 = smov [#allocation6]   ;;  %s55_s5 = int_to_ptr.hbm [resolvable:$true] %s54_s5 }
   0x9   :  { %s42_s7 = sshll.u32 %s393_s6, 4  ;;  %s394_s0 = smov [#allocation7]   ;;  %s43_s7 = int_to_ptr.vmem [resolvable:$true] %s42_s7 }
   0xa   :  { %48 = dma.hbm_to_vmem [thread:$0]  %s41_s29, 8192, %s43_s7, [#allocation5], %s390_s23, %s390_s23, %s391_s24  }
   0xb   :  { %s56_s8 = sshll.u32 %s394_s0, 4  ;;  %s57_s8 = int_to_ptr.vmem [resolvable:$true] %s56_s8 }
   0xc   :  { %59 = dma.hbm_to_vmem [thread:$0]  %s55_s5, 128, %s57_s8, [#allocation8]  }
   0xd   :  { %383 = dma.done.wait [#allocation3], 128  }
   0xe   :  { %384 = vsyncadd [#allocation3], 4294967168 }
   0xf   :  { %385 = dma.done.wait [#allocation5], 8832  }
  0x10   :  { %386 = vsyncadd [#allocation5], 4294958464 }
  0x11   :  { %387 = dma.done.wait [#allocation8], 128  }
  0x12   :  { %388 = vsyncadd [#allocation8], 4294967168  ;;  %vm88_vm0 = vcmask 1042432   ;;  %v82_v0 = vld [vmem:[#allocation4 + $0x20] sm:$0x7]  ;;  %v81_v1 = vld [vmem:[#allocation4 + $0x18] sm:$0xff] }
  0x13   :  { %277 = vmatpush.msk.msra.mxu0 %vm88_vm0, %v82_v0  ;;  %v80_v2 = vld [vmem:[#allocation4 + $0x10] sm:$0xff]  ;;  %v128_v3 = vld [vmem:[#allocation6 + $0x78] sm:$0xff]  ;;  %v127_v4 = vld [vmem:[#allocation6 + $0x70] sm:$0xff]  ;;  %vm84_vm1 = vcmask 285696   ;;  %vm268_vm2 = vcmask 15360  }
  0x14   :  { %130 = vmatpush.msra.mxu1 %v128_v3  ;;  %v79_v5 = vld [vmem:[#allocation4 + $0x8] sm:$0xff]  ;;  %v126_v6 = vld [vmem:[#allocation6 + $0x68] sm:$0xff]  ;;  %v78_v7 = vld [vmem:[#allocation4] sm:$0xff] }
  0x15   :  { %104 = vmatpush.msra.mxu0 %v81_v1  ;;  %v125_v8 = vld [vmem:[#allocation6 + $0x60] sm:$0xff]  ;;  %v77_v9 = vld [vmem:[#allocation2] sm:$0xff]  ;;  %v124_v10 = vld [vmem:[#allocation6 + $0x58] sm:$0xff] }
  0x16   :  { %131 = vmatpush.msra.mxu1 %v127_v4  ;;  %v123_v11 = vld [vmem:[#allocation6 + $0x50] sm:$0xff]  ;;  %v122_v12 = vld [vmem:[#allocation6 + $0x48] sm:$0xff]  ;;  %v121_v13 = vld [vmem:[#allocation6 + $0x40] sm:$0xff] }
  0x17   :  { %105 = vmatpush.msra.mxu0 %v80_v2  ;;  %v120_v14 = vld [vmem:[#allocation6 + $0x38] sm:$0xff]  ;;  %v119_v15 = vld [vmem:[#allocation6 + $0x30] sm:$0xff]  ;;  %v118_v16 = vld [vmem:[#allocation6 + $0x28] sm:$0xff] }
  0x18   :  { %132 = vmatpush.msra.mxu1 %v126_v6  ;;  %v117_v17 = vld [vmem:[#allocation6 + $0x20] sm:$0xff]  ;;  %v116_v18 = vld [vmem:[#allocation6 + $0x18] sm:$0xff]  ;;  %v115_v19 = vld [vmem:[#allocation6 + $0x10] sm:$0xff] }
  0x19   :  { %106 = vmatpush.msra.mxu0 %v79_v5  ;;  %v114_v20 = vld [vmem:[#allocation6 + $0x8] sm:$0xff]  ;;  %v113_v21 = vld [vmem:[#allocation6] sm:$0xff]  ;;  %v167_v22 = vld [vmem:[#allocation6 + $0xf8] sm:$0xff] }
  0x1a   :  { %133 = vmatpush.msra.mxu1 %v125_v8  ;;  %v166_v23 = vld [vmem:[#allocation6 + $0xf0] sm:$0xff]  ;;  %169 = vmatpush.msra.mxu2 %v167_v22  ;;  %v165_v24 = vld [vmem:[#allocation6 + $0xe8] sm:$0xff]  ;;  %v164_v25 = vld [vmem:[#allocation6 + $0xe0] sm:$0xff] }
  0x1b   :  { %107 = vmatpush.msra.mxu0 %v78_v7  ;;  %v163_v26 = vld [vmem:[#allocation6 + $0xd8] sm:$0xff]  ;;  %v162_v27 = vld [vmem:[#allocation6 + $0xd0] sm:$0xff]  ;;  %v161_v28 = vld [vmem:[#allocation6 + $0xc8] sm:$0xff] }
  0x1c   :  { %278 = vmatmul.msk.f32.vlgmr.msra.gmra.mxu0 %vm84_vm1, %v77_v9  ;;  %134 = vmatpush.msra.mxu1 %v124_v10  ;;  %v160_v29 = vld [vmem:[#allocation6 + $0xc0] sm:$0xff]  ;;  %v159_v30 = vld [vmem:[#allocation6 + $0xb8] sm:$0xff]  ;;  %v158_v31 = vld [vmem:[#allocation6 + $0xb0] sm:$0xff] }
  0x1d   :  { %170 = vmatpush.msra.mxu2 %v166_v23  ;;  %v157_v32 = vld [vmem:[#allocation6 + $0xa8] sm:$0xff]  ;;  %v156_v33 = vld [vmem:[#allocation6 + $0xa0] sm:$0xff]  ;;  %v155_v35 = vld [vmem:[#allocation6 + $0x98] sm:$0xff] }
  0x1e   :  { %135 = vmatpush.msra.mxu1 %v123_v11  ;;  %v432_v34 = vld [vmem:[#allocation7] sm:$0xff]  ;;  %v154_v40 = vld [vmem:[#allocation6 + $0x90] sm:$0xff]  ;;  %v153_v41 = vld [vmem:[#allocation6 + $0x88] sm:$0xff] }
  0x1f   :  { %171 = vmatpush.msra.mxu2 %v165_v24  ;;  %v83_v36 = vperm.slane %v432_v34, 0  ;;  %v152_v42 = vld [vmem:[#allocation6 + $0x80] sm:$0xff]  ;;  %v206_v43 = vld [vmem:[#allocation6 + $0x178] sm:$0xff]  ;;  %v205_v44 = vld [vmem:[#allocation6 + $0x170] sm:$0xff]  ;;  %v129_v56 = vperm.slane %v432_v34, 1  ;;  %v246_v23 = vperm.slane %v432_v34, 4 }
  0x20   :  { %136 = vmatpush.msra.mxu1 %v122_v12  ;;  %208 = vmatpush.msra.mxu3 %v206_v43  ;;  %v204_v45 = vld [vmem:[#allocation6 + $0x168] sm:$0xff]  ;;  %v203_v46 = vld [vmem:[#allocation6 + $0x160] sm:$0xff]  ;;  %v202_v47 = vld [vmem:[#allocation6 + $0x158] sm:$0xff]  ;;  %v168_v12 = vperm.slane %v432_v34, 2 }
  0x21   :  { %172 = vmatpush.msra.mxu2 %v164_v25  ;;  %v201_v48 = vld [vmem:[#allocation6 + $0x150] sm:$0xff]  ;;  %v200_v49 = vld [vmem:[#allocation6 + $0x148] sm:$0xff]  ;;  %v199_v50 = vld [vmem:[#allocation6 + $0x140] sm:$0xff] }
  0x22   :  { %137 = vmatpush.msra.mxu1 %v121_v13  ;;  %209 = vmatpush.msra.mxu3 %v205_v44  ;;  %v198_v51 = vld [vmem:[#allocation6 + $0x138] sm:$0xff]  ;;  %v197_v52 = vld [vmem:[#allocation6 + $0x130] sm:$0xff]  ;;  %v196_v53 = vld [vmem:[#allocation6 + $0x128] sm:$0xff] }
  0x23   :  { %173 = vmatpush.msra.mxu2 %v163_v26  ;;  %v195_v54 = vld [vmem:[#allocation6 + $0x120] sm:$0xff]  ;;  %v194_v55 = vld [vmem:[#allocation6 + $0x118] sm:$0xff]  ;;  %v193_v60 = vld [vmem:[#allocation6 + $0x110] sm:$0xff] }
  0x24   :  { %138 = vmatpush.msra.mxu1 %v120_v14  ;;  %210 = vmatpush.msra.mxu3 %v204_v45  ;;  %v192_v61 = vld [vmem:[#allocation6 + $0x108] sm:$0xff]  ;;  %v191_v62 = vld [vmem:[#allocation6 + $0x100] sm:$0xff]  ;;  %v245_v63 = vld [vmem:[#allocation6 + $0x1f8] sm:$0xff] }
  0x25   :  { %174 = vmatpush.msra.mxu2 %v162_v27  ;;  %v244_v0 = vld [vmem:[#allocation6 + $0x1f0] sm:$0xff]  ;;  %247 = vmatpush.msrb.mxu0 %v245_v63  ;;  %v243_v1 = vld [vmem:[#allocation6 + $0x1e8] sm:$0xff]  ;;  %v242_v2 = vld [vmem:[#allocation6 + $0x1e0] sm:$0xff] }
  0x26   :  { %139 = vmatpush.msra.mxu1 %v119_v15  ;;  %211 = vmatpush.msra.mxu3 %v203_v46  ;;  %v241_v3 = vld [vmem:[#allocation6 + $0x1d8] sm:$0xff]  ;;  %v240_v4 = vld [vmem:[#allocation6 + $0x1d0] sm:$0xff]  ;;  %v239_v5 = vld [vmem:[#allocation6 + $0x1c8] sm:$0xff] }
  0x27   :  { %175 = vmatpush.msra.mxu2 %v161_v28  ;;  %248 = vmatpush.msrb.mxu0 %v244_v0  ;;  %v238_v6 = vld [vmem:[#allocation6 + $0x1c0] sm:$0xff]  ;;  %v237_v7 = vld [vmem:[#allocation6 + $0x1b8] sm:$0xff]  ;;  %v236_v8 = vld [vmem:[#allocation6 + $0x1b0] sm:$0xff] }
  0x28   :  { %140 = vmatpush.msra.mxu1 %v118_v16  ;;  %212 = vmatpush.msra.mxu3 %v202_v47  ;;  %v235_v9 = vld [vmem:[#allocation6 + $0x1a8] sm:$0xff]  ;;  %v234_v10 = vld [vmem:[#allocation6 + $0x1a0] sm:$0xff]  ;;  %v233_v11 = vld [vmem:[#allocation6 + $0x198] sm:$0xff] }
  0x29   :  { %176 = vmatpush.msra.mxu2 %v160_v29  ;;  %249 = vmatpush.msrb.mxu0 %v243_v1  ;;  %v232_v16 = vld [vmem:[#allocation6 + $0x190] sm:$0xff] }
  0x2a   :  { %141 = vmatpush.msra.mxu1 %v117_v17  ;;  %213 = vmatpush.msra.mxu3 %v201_v48  ;;  %v231_v17 = vld [vmem:[#allocation6 + $0x188] sm:$0xff] }
  0x2b   :  { %177 = vmatpush.msra.mxu2 %v159_v30  ;;  %250 = vmatpush.msrb.mxu0 %v242_v2 }
  0x2c   :  { %142 = vmatpush.msra.mxu1 %v116_v18  ;;  %214 = vmatpush.msra.mxu3 %v200_v49  ;;  %v230_v18 = vld [vmem:[#allocation6 + $0x180] sm:$0xff] }
  0x2d   :  { %178 = vmatpush.msra.mxu2 %v158_v31  ;;  %251 = vmatpush.msrb.mxu0 %v241_v3 }
  0x2e   :  { %143 = vmatpush.msra.mxu1 %v115_v19  ;;  %215 = vmatpush.msra.mxu3 %v199_v50  ;;  %v207_v19 = vperm.slane %v432_v34, 3 }
  0x2f   :  { %179 = vmatpush.msra.mxu2 %v157_v32  ;;  %252 = vmatpush.msrb.mxu0 %v240_v4 }
  0x30   :  { %144 = vmatpush.msra.mxu1 %v114_v20  ;;  %216 = vmatpush.msra.mxu3 %v198_v51 }
  0x31   :  { %180 = vmatpush.msra.mxu2 %v156_v33  ;;  %253 = vmatpush.msrb.mxu0 %v239_v5 }
  0x32   :  { %145 = vmatpush.msra.mxu1 %v113_v21  ;;  %217 = vmatpush.msra.mxu3 %v197_v52 }
  0x33   :  { %181 = vmatpush.msra.mxu2 %v155_v35  ;;  %254 = vmatpush.msrb.mxu0 %v238_v6 }
  0x34   :  { %218 = vmatpush.msra.mxu3 %v196_v53 }
  0x35   :  { %182 = vmatpush.msra.mxu2 %v154_v40  ;;  %255 = vmatpush.msrb.mxu0 %v237_v7 }
  0x36   :  { %219 = vmatpush.msra.mxu3 %v195_v54 }
  0x37   :  { %183 = vmatpush.msra.mxu2 %v153_v41  ;;  %256 = vmatpush.msrb.mxu0 %v236_v8 }
  0x38   :  { %220 = vmatpush.msra.mxu3 %v194_v55 }
  0x39   :  { %184 = vmatpush.msra.mxu2 %v152_v42  ;;  %257 = vmatpush.msrb.mxu0 %v235_v9 }
  0x3a   :  { %221 = vmatpush.msra.mxu3 %v193_v60 }
  0x3b   :  { %258 = vmatpush.msrb.mxu0 %v234_v10 }
  0x3c   :  { %222 = vmatpush.msra.mxu3 %v192_v61 }
  0x3d   :  { %259 = vmatpush.msrb.mxu0 %v233_v11 }
  0x3e   :  { %223 = vmatpush.msra.mxu3 %v191_v62 }
  0x3f   :  { %260 = vmatpush.msrb.mxu0 %v232_v16 }
  0x41   :  { %261 = vmatpush.msrb.mxu0 %v231_v17 }
  0x43   :  { %262 = vmatpush.msrb.mxu0 %v230_v18 }
  0x99   :  { %v109_v37 = vpop.f32.mrf.mxu0 }
  0x9a   :  { %v110_v38 = vadd.f32 %v109_v37, %v83_v36 }
  0x9c   :  { %v112_v39 = vmax.f32 %v110_v38, 0.0 }
  0x9e   :  { %146 = vmatmul.f32.vlgmr.msra.gmra.mxu1 %v112_v39 }
 0x11b   :  { %v147_v57 = vpop.f32.mrf.mxu1 }
 0x11c   :  { %v148_v58 = vadd.f32 %v147_v57, %v129_v56 }
 0x11e   :  { %v150_v59 = vmax.f32 %v148_v58, 0.0 }
 0x120   :  { %185 = vmatmul.f32.vlgmr.msra.gmra.mxu2 %v150_v59 }
 0x1a3   :  { %v186_v13 = vpop.f32.mrf.mxu2 }
 0x1a4   :  { %v187_v14 = vadd.f32 %v186_v13, %v168_v12 }
 0x1a6   :  { %v189_v15 = vmax.f32 %v187_v14, 0.0 }
 0x1a8   :  { %224 = vmatmul.f32.vlgmr.msra.gmra.mxu3 %v189_v15 }
 0x22b   :  { %v225_v20 = vpop.f32.mrf.mxu3 }
 0x22c   :  { %v226_v21 = vadd.f32 %v225_v20, %v207_v19 }
 0x22e   :  { %v228_v22 = vmax.f32 %v226_v21, 0.0 }
 0x230   :  { %263 = vmatmul.f32.vlgmr.msrb.gmra.mxu0 %v228_v22 }
 0x2ad   :  { %v264_v24 = vpop.f32.mrf.mxu0 }
 0x2ae   :  { %v265_v25 = vadd.f32 %v264_v24, %v246_v23 }
 0x2b0   :  { %285 = vtanh.f32 %v265_v25 }
 0x2b6   :  { %v286_v26 = vpop.eup %285 }
 0x2b7   :  { %269 = vst.msk [vmem:[%s446_s4] sm:$0xff] %vm268_vm2, %v286_v26 }
 0x2b8   :  { %274 = vsyncpa [#allocation3], 1 }
 0x2b9   :  { %275 = vsyncpa [#allocation5], 1 }
 0x2ba   :  { %276 = vsyncpa [#allocation8], 1 }

</bundles_post_ra>
